<compile_context>
chip_gen: v6e
topology: v6e:2x2x1
jax: 0.10.0
libtpu: 0.0.40
codegen_flags: <defaults>
</compile_context>

<pallas_src>
import jax
import jax.numpy as jnp
from jax import lax
from jax.experimental import pallas as pl
from jax.experimental.pallas import tpu as pltpu


def _conv_body(win, w_ref, b_ref, o_ref, K, TL):
    # win   : (2*Cin, TL + K - 1)   input window (channels x positions)
    # w_ref : (2*Cout, K*2*Cin)     fused complex weight, tap-major contraction
    # b_ref : (2*Cout, 1)           fused bias [br - bi ; br + bi]
    # o_ref : (1, 2*Cout, TL)       output tile (NCL)
    if K == 1:
        xcol = win
    else:
        # im2col: K lane-shifted copies stacked along sublanes (tap-major),
        # folding the taps into the MXU contraction dimension (K*2*Cin deep).
        xcol = jnp.concatenate([win[:, k:k + TL] for k in range(K)], axis=0)
    acc = jnp.dot(w_ref[...], xcol, preferred_element_type=jnp.float32)  # (2*Cout, TL)
    o_ref[0] = (acc + b_ref[...]).astype(o_ref.dtype)


def _make_kernel(K, TL, multi_tile):
    if multi_tile:
        def kernel(xm_ref, xh_ref, w_ref, b_ref, o_ref):
            # xm_ref: (1, 2*Cin, TL) main tile; xh_ref: (1, 2*Cin, 128) halo tile.
            win = xm_ref[0]
            if K > 1:
                win = jnp.concatenate([win, xh_ref[0, :, :K - 1]], axis=-1)
            _conv_body(win, w_ref, b_ref, o_ref, K, TL)
    else:
        def kernel(x_ref, w_ref, b_ref, o_ref):
            # x_ref: (1, 2*Cin, L) with L == TL + K - 1 (single tile per batch).
            _conv_body(x_ref[0], w_ref, b_ref, o_ref, K, TL)
    return kernel


def _pick_l_tile(L_out, K):
    # Exact tiling only: tiles are multiples of 128 (lane-dense, unmasked
    # stores) and must divide L_out (no ragged edge, no OOB window reads).
    # Capped at 512 f32 rows to stay double-buffer friendly incl. 64 MiB v7x.
    if K - 1 <= 128:
        for tl in (512, 256, 128):
            if L_out % tl == 0 and L_out // tl > 1:
                return tl
    return L_out


def complex_conv1d(x, w_real, w_imag, b_real, b_imag):
    """x: (B, 2*Cin, L); w_*: (Cout, Cin, K); b_*: (Cout,). Returns (B, 2*Cout, L_out)."""
    B, C2, L = x.shape
    Cout, Cin, K = w_real.shape
    assert C2 == 2 * Cin
    L_out = L - K + 1
    assert L_out >= 1
    C2in, C2out = 2 * Cin, 2 * Cout

    # Fused complex weight: [Real | Imag]_out = W_blk @ [real ; imag]_in.
    w_blk = jnp.concatenate(
        [jnp.concatenate([w_real, -w_imag], axis=1),   # Real rows: [ Wr, -Wi]
         jnp.concatenate([w_imag, w_real], axis=1)],   # Imag rows: [ Wi,  Wr]
        axis=0)                                        # (2*Cout, 2*Cin, K)
    # Contraction index is tap-major (k*2*Cin + c) to match the kernel im2col.
    w_fused = jnp.transpose(w_blk, (0, 2, 1)).reshape(C2out, K * C2in).astype(x.dtype)
    # TODO(synk): cast x / w_fused to bfloat16 here for ~2x MXU+HBM on v5e/v6e/v7x
    # if the accuracy budget allows; kept f32 to hold the 1e-5 test tolerance.

    # Bias algebra folded once: Real += (br - bi), Imag += (br + bi).
    b_eff = jnp.concatenate([b_real - b_imag, b_real + b_imag])
    b_eff = b_eff.reshape(C2out, 1).astype(jnp.float32)

    TL = _pick_l_tile(L_out, K)
    n_lt = L_out // TL
    multi = n_lt > 1
    HALO = 128

    kernel = _make_kernel(K, TL, multi)

    if multi:
        in_specs = [
            pl.BlockSpec((1, C2in, TL), lambda b, j: (b, 0, j)),
            # K-1 halo columns arrive through a second, 128-wide view of x
            # starting right after the main tile (TL is a multiple of 128).
            pl.BlockSpec((1, C2in, HALO),
                         lambda b, j: (b, 0, (j + 1) * (TL // HALO))),
            pl.BlockSpec((C2out, K * C2in), lambda b, j: (0, 0)),
            pl.BlockSpec((C2out, 1), lambda b, j: (0, 0)),
        ]
        inputs = (x, x, w_fused, b_eff)
        xm_cols = TL
        xh_cols = HALO
    else:
        in_specs = [
            pl.BlockSpec((1, C2in, L), lambda b, j: (b, 0, 0)),
            pl.BlockSpec((C2out, K * C2in), lambda b, j: (0, 0)),
            pl.BlockSpec((C2out, 1), lambda b, j: (0, 0)),
        ]
        inputs = (x, w_fused, b_eff)
        xm_cols = L
        xh_cols = 0

    # Explicit VMEM budget: 2x-buffered input/halo/output blocks + weights.
    itemsize = jnp.dtype(x.dtype).itemsize
    vmem_needed = (2 * (C2in * (xm_cols + xh_cols) + C2out * TL) * itemsize
                   + 2 * C2out * (K * C2in + 1) * 4 + (2 << 20))
    vmem_limit = int(min(max(vmem_needed, 16 << 20), 48 << 20))

    return pl.pallas_call(
        kernel,
        out_shape=jax.ShapeDtypeStruct((B, C2out, L_out), x.dtype),
        grid=(B, n_lt),
        in_specs=in_specs,
        out_specs=pl.BlockSpec((1, C2out, TL), lambda b, j: (b, 0, j)),
        compiler_params=pltpu.CompilerParams(
            dimension_semantics=("parallel", "parallel"),
            vmem_limit_bytes=vmem_limit),
    )(*inputs)


def _reference(x, w_real, w_imag, b_real, b_imag):
    """Plain-JAX reference mirroring the PyTorch forward."""
    Cin = w_real.shape[1]
    real_in = x[:, :Cin, :]
    imag_in = x[:, Cin:, :]

    def conv(inp, w, b):
        y = lax.conv_general_dilated(
            inp, w, window_strides=(1,), padding='VALID',
            dimension_numbers=('NCH', 'OIH', 'NCH'))
        return y + b[None, :, None]

    rr = conv(real_in, w_real, b_real)
    ii = conv(imag_in, w_imag, b_imag)
    ri = conv(imag_in, w_real, b_real)
    ir = conv(real_in, w_imag, b_imag)
    return jnp.concatenate([rr - ii, ri + ir], axis=1)


if __name__ == "__main__":
    # Small deterministic setup consistent with the module's forward.
    B, Cin, Cout, K, L = 2, 4, 4, 3, 16

    key = jax.random.PRNGKey(0)
    kx, kwr, kwi, kbr, kbi = jax.random.split(key, 5)

    x = jax.random.normal(kx, (B, 2 * Cin, L), dtype=jnp.float32)

    # TODO(synk): ComplexIndependentFilters / ComplexInit orthogonal-complex
    # initialization is not reproduced; deterministic normal init is used.
    w_real = 0.1 * jax.random.normal(kwr, (Cout, Cin, K), dtype=jnp.float32)
    w_imag = 0.1 * jax.random.normal(kwi, (Cout, Cin, K), dtype=jnp.float32)
    # Module inits biases to zero; use small nonzero values here so the
    # fused-bias path is actually exercised by the check.
    b_real = 0.05 * jax.random.normal(kbr, (Cout,), dtype=jnp.float32)
    b_imag = 0.05 * jax.random.normal(kbi, (Cout,), dtype=jnp.float32)

    out = complex_conv1d(x, w_real, w_imag, b_real, b_imag)
    out = jax.block_until_ready(out)

    ref = _reference(x, w_real, w_imag, b_real, b_imag)
    assert out.shape == (B, 2 * Cout, L - K + 1), out.shape
    assert jnp.allclose(out, ref, atol=1e-5, rtol=1e-5), \
        float(jnp.max(jnp.abs(out - ref)))

    print("KERNEL_OK")
</pallas_src>

<mosaic_0001>
module attributes {stable_mosaic.version = 11 : i64} {
  func.func @kernel(%arg0: i32, %arg1: i32, %arg2: memref<1x8x16xf32, #tpu.memory_space<vmem>>, %arg3: memref<8x24xf32, #tpu.memory_space<vmem>>, %arg4: memref<8x1xf32, #tpu.memory_space<vmem>>, %arg5: memref<1x8x14xf32, #tpu.memory_space<vmem>>) attributes {dimension_semantics = [#tpu.dimension_semantics<parallel>, #tpu.dimension_semantics<parallel>], iteration_bounds = array<i64: 2, 1>, scalar_prefetch = 0 : i64, scratch_operands = 0 : i64, tpu.core_type = #tpu.core_type<tc>, window_params = [{transform_indices = @transform_0, window_bounds = array<i64: 1, 8, 16>}, {pipeline_mode = #tpu.pipeline_mode<synchronous>, transform_indices = @transform_1, window_bounds = array<i64: 8, 24>}, {pipeline_mode = #tpu.pipeline_mode<synchronous>, transform_indices = @transform_2, window_bounds = array<i64: 8, 1>}, {transform_indices = @transform_3, window_bounds = array<i64: 1, 8, 14>}]} {
    %c0 = arith.constant 0 : index
    %c0_0 = arith.constant 0 : index
    %c0_1 = arith.constant 0 : index
    %0 = vector.load %arg2[%c0, %c0_0, %c0_1] : memref<1x8x16xf32, #tpu.memory_space<vmem>>, vector<1x8x16xf32>
    %1 = vector.shape_cast %0 : vector<1x8x16xf32> to vector<8x16xf32>
    %2 = vector.extract_strided_slice %1 {offsets = [0, 0], sizes = [8, 14], strides = [1, 1]} : vector<8x16xf32> to vector<8x14xf32>
    %3 = vector.extract_strided_slice %1 {offsets = [0, 1], sizes = [8, 14], strides = [1, 1]} : vector<8x16xf32> to vector<8x14xf32>
    %4 = vector.extract_strided_slice %1 {offsets = [0, 2], sizes = [8, 14], strides = [1, 1]} : vector<8x16xf32> to vector<8x14xf32>
    %5 = tpu.concatenate %2, %3, %4 in 0 : vector<8x14xf32>, vector<8x14xf32>, vector<8x14xf32> -> vector<24x14xf32>
    %c0_2 = arith.constant 0 : index
    %c0_3 = arith.constant 0 : index
    %6 = vector.load %arg3[%c0_2, %c0_3] : memref<8x24xf32, #tpu.memory_space<vmem>>, vector<8x24xf32>
    %cst = arith.constant dense<0.000000e+00> : vector<8x14xf32>
    %7 = tpu.matmul %6, %5, %cst {dimension_numbers = #tpu.dot_dimension_numbers<[1], [0], [0], [1], [0, 0, 1, 1], [], []>} : vector<8x24xf32>, vector<24x14xf32>, vector<8x14xf32> -> vector<8x14xf32>
    %c0_4 = arith.constant 0 : index
    %c0_5 = arith.constant 0 : index
    %8 = vector.load %arg4[%c0_4, %c0_5] : memref<8x1xf32, #tpu.memory_space<vmem>>, vector<8x1xf32>
    %9 = vector.broadcast %8 : vector<8x1xf32> to vector<8x14xf32>
    %10 = arith.addf %7, %9 : vector<8x14xf32>
    %c0_6 = arith.constant 0 : index
    %c0_7 = arith.constant 0 : index
    %c0_8 = arith.constant 0 : index
    %11 = vector.load %arg5[%c0_6, %c0_7, %c0_8] : memref<1x8x14xf32, #tpu.memory_space<vmem>>, vector<1x8x14xf32>
    %12 = vector.shape_cast %11 : vector<1x8x14xf32> to vector<8x14xf32>
    %13 = vector.shape_cast %10 : vector<8x14xf32> to vector<1x8x14xf32>
    tpu.vector_store %arg5[%c0_6, %c0_7, %c0_8], %13 {strides = array<i32>} : memref<1x8x14xf32, #tpu.memory_space<vmem>>, vector<1x8x14xf32>,
    return
  }
  func.func @transform_0(%arg0: i32, %arg1: i32) -> (i32, i32, i32) {
    %c0_i32 = arith.constant 0 : i32
    %c0_i32_0 = arith.constant 0 : i32
    %c0_i32_1 = arith.constant 0 : i32
    return %arg0, %c0_i32, %c0_i32_0 : i32, i32, i32
  }
  func.func @transform_1(%arg0: i32, %arg1: i32) -> (i32, i32) {
    %c0_i32 = arith.constant 0 : i32
    %c0_i32_0 = arith.constant 0 : i32
    %c0_i32_1 = arith.constant 0 : i32
    return %c0_i32, %c0_i32_0 : i32, i32
  }
  func.func @transform_2(%arg0: i32, %arg1: i32) -> (i32, i32) {
    %c0_i32 = arith.constant 0 : i32
    %c0_i32_0 = arith.constant 0 : i32
    %c0_i32_1 = arith.constant 0 : i32
    return %c0_i32, %c0_i32_0 : i32, i32
  }
  func.func @transform_3(%arg0: i32, %arg1: i32) -> (i32, i32, i32) {
    %c0_i32 = arith.constant 0 : i32
    %c0_i32_0 = arith.constant 0 : i32
    return %arg0, %c0_i32, %arg1 : i32, i32, i32
  }
}

</mosaic_0001>

<bundles_post_ra>
// kernel: tpu_custom_call.1
= control target key start
LH: loop header
LB: loop body
LE: loop exit
PB: predicated region body
PF: predicated region fallthrough
CT: control target
= control target key end

     0   :  { %8 = vsyncpa [#allocation3], 0  ;;  %s768_s0 = inlined_call_operand.hbm [shape: f32[2,8,16], index: 0, kind: input, shape index: {}]   ;;  %s769_s1 = inlined_call_operand.vmem [shape: f32[8,24], index: 1, kind: input, shape index: {}]   ;;  %s770_s2 = inlined_call_operand.vmem [shape: f32[8,1], index: 2, kind: input, shape index: {}]   ;;  %s771_s3 = inlined_call_operand.hbm [shape: f32[2,8,14], index: 3, kind: output, shape index: {}]  }
   0x1   :  { %10 = vsyncpa [#allocation3 + $0x1], 0 }
   0x2   :  { %11 = vsyncpa [#allocation4], 0 }
   0x3   :  { %13 = vsyncpa [#allocation4 + $0x1], 0  ;;  %s618_s12 = smov 0   ;;  %s620_s13 = smov 0  }
   0x4   :  { %s622_s14 = smov 0   ;;  %s624_s15 = smov 0  }
   0x5   :  { %s626_s16 = smov 0   ;;  %s628_s17 = smov 0  }
   0x6 LB: > { %s385_s18 = sadd.s32 4294967295, %s589_s17   ;;  %s386_s19 = sadd.s32 4294967294, %s589_s17   ;;  %s589_s17 = sphi %s628_s17, %s19_s17   ;;  %s585_s16 = sphi %s626_s16, %s783_s16   ;;  %s581_s15 = sphi %s624_s15, %s782_s15   ;;  %s577_s14 = sphi %s622_s14, %s781_s14   ;;  %s573_s13 = sphi %s620_s13, %s780_s13   ;;  %s569_s12 = sphi %s618_s12, %s779_s12  }
   0x7   : > { %s31_s20 = sadd.s32 1, %s585_s16  ;;  %s38_s21 = sadd.s32 1, %s577_s14 }
   0x8   : > { %p33_p0 = scmp.ge.s32.totalorder %s31_s20, 2  ;;  %p45_p1 = scmp.ne.s32.totalorder %s577_s14, %s573_s13 }
   0x9   : > { %p46_p2 = scmp.eq.s32.totalorder %s589_s17, 0  ;;  %p51_p3 = scmp.ne.s32.totalorder %s573_s13, %s569_s12 }
   0xa   : > { %s785_s20 = smov (%p33_p0, %s31_s20), 0  ;;  %p52_p5 = scmp.eq.s32.totalorder %s385_s18, 0 }
   0xb   : > { %p659_p4 = por %p46_p2, %p45_p1  ;;  %s35_s23 = ssub.s32 %s585_s16, %s785_s20 }
   0xc   : > { %p119_p6 = scmp.eq.s32.totalorder %s385_s18, 1  ;;  %p36_p7 = scmp.eq.s32.totalorder %s35_s23, 0 }
   0xd   : > { %p665_p8 = por %p52_p5, %p51_p3  ;;  %p125_p10 = scmp.eq.s32.totalorder %s386_s19, 1 }
   0xe   : > { %p669_p9 = por %p119_p6, %p45_p1  ;;  %p424_p13 = scmp.lt.s32.totalorder %s589_s17, 2 }
   0xf   : > { %s674_s26 = scalar_select %p36_p7, %s577_s14, %s38_s21  }
  0x10   : > { %p676_p11 = por %p125_p10, %p51_p3  ;;  %s151_s28 = sand.u32 1, %s577_s14  }
  0x11   : > { %s389_s29 = sshll.u32 %s151_s28, 3  ;;  %s390_s30 = sshll.u32 %s585_s16, 7 }
  0x12   : > { %s775_s27 = scalar_select %p676_p11, 1, 0 }
  0x13   : > { %s160_s6 = scalar_lea.hbm %s768_s0, %s390_s30  ;;  %s155_s7 = scalar_lea.vmem [#allocation2], %s389_s29 }
  0x14   : > { %s162_s8 = sshll.u32 %s155_s7, 4  ;;  %p689_p0 = pnand %p424_p13, %p659_p4  ;;  %s163_s8 = int_to_ptr.vmem [resolvable:$true] %s162_s8 }
  0x15   : > { %p391_p1 = scmp.ge.s32.totalorder %s589_s17, 1  ;;  %p167_p2 = scmp.lt.s32.totalorder %s589_s17, 3 }
  0x16   : > { %s152_s10 = scalar_lea.sflag [#allocation3], %s151_s28  ;;  %p483_p3 = pneg %p689_p0 }
  0x17   : > { %s494_s11 = scalar_lea.vmem %s163_s8, 128  ;;  %s591_s18 = smov [#allocation2]  }
  0x18   : > { %p495_p5 = scmp.ne.s32.totalorder %s163_s8, %s494_s11  ;;  %s499_s19 = sshll.u32 %s591_s18, 4  ;;  %s500_s19 = int_to_ptr.vmem [resolvable:$false] %s499_s19 }
  0x19   : > { %s501_s21 = scalar_lea.vmem %s500_s19, 256  ;;  %p502_p10 = scmp.lt.s32.totalorder %s163_s8, %s500_s19 }
  0x1a   : > { %p497_p6 = pnand %p495_p5, %p483_p3  ;;  %p503_p12 = scmp.lt.s32.totalorder %s501_s21, %s494_s11 }
  0x1c   : > { %p498_p7 = pneg %p497_p6  ;;  %p504_p4 = por %p503_p12, %p502_p10 }
  0x1e   : > { %p505_p13 = pnand %p504_p4, %p498_p7 }
  0x20   : > { %508 = shalt.err (!%p505_p13)
}
  0x21   : > { %419 = dma.hbm_to_vmem [thread:$0]  (!%p689_p0), %s160_s6, 128, %s163_s8, %s152_s10  }
  0x22   : > { %p168_p11 = pnand %p391_p1, %p167_p2 }
  0x23   : > { %s704_s22 = sand.u32 (!%p168_p11), 1, %s573_s13  }
  0x24   : > { %171 = sbr.rel (%p168_p11) target bundleno = 375 (0x177), region = 32  ;;  %s392_s23 = sshll.u32 (!%p168_p11), %s704_s22, 3 }
  0x25   : > { %s174_s28 = scalar_lea.sflag (!%p168_p11), [#allocation3], %s704_s22  ;;  %s177_s29 = scalar_lea.vmem (!%p168_p11), [#allocation2], %s392_s23 }
  0x29   : > { %560 = dma.done.wait (%p665_p8), %s174_s28, 128  }
  0x2a   : > { %562 = vsyncadd (%p665_p8), %s174_s28, 4294967168  ;;  %v592_v0 = vmov 0.0   ;;  %vm593_vm0 = vmmov 0   ;;  %v594_v1 = vmov 0   ;;  %v200_v2 = vld [vmem:[%s177_s29] sm:$0xff]  ;;  %s595_s5 = smov 126  }
  0x2b   : > { %403 = vmatprep.subr.mxu0 %v592_v0  ;;  %409 = vmatprep.mubr.msk.f32.mxu0 %vm593_vm0, %v592_v0  ;;  %v209_v3 = vld [vmem:[%s770_s2] sm:$0xff]  ;;  %s596_s6 = smov 127   ;;  %vm215_vm1 = vcmask 195584   ;;  %s396_s8 = sshll.u32 %s581_s15, 7  ;;  %vm289_vm2 = vcmask 113664  }
  0x2c   : > { %479 = vset.pattern.permute.xlu1 %v594_v1  ;;  %480 = vset.pattern.permute.xlu0 %v594_v1  ;;  %v208_v6 = vld [vmem:[%s769_s1] sm:$0xff]  ;;  %s199_s9 = scalar_lea.vmem [#allocation5], %s392_s23  ;;  %s726_s19 = scalar_lea.hbm %s771_s3, %s396_s8 }
  0x2d   : > { %205 = vrot.lane.b32.xlu0 %v200_v2, %s595_s5  ;;  %212 = vperm.xlu1 %479, %v209_v3   ;;  %s306_s10 = sshll.u32 %s199_s9, 4  ;;  %s292_s21 = scalar_lea.sflag [#allocation4], %s704_s22  ;;  %s307_s10 = int_to_ptr.vmem [resolvable:$true] %s306_s10 }
  0x2e   : > { %s509_s28 = scalar_lea.vmem %s307_s10, 128  ;;  %s597_s15 = smov [#allocation5]  }
  0x2f   : > { %p510_p8 = scmp.ne.s32.totalorder %s307_s10, %s509_s28  ;;  %s513_s23 = sshll.u32 %s597_s15, 4  ;;  %s514_s23 = int_to_ptr.vmem [resolvable:$false] %s513_s23 }
  0x30   : > { %s515_s29 = scalar_lea.vmem %s514_s23, 256  ;;  %p516_p0 = scmp.lt.s32.totalorder %s307_s10, %s514_s23 }
  0x31   : > { %202 = vrot.lane.b32.xlu0 %v200_v2, %s596_s6  ;;  %p511_p11 = pnand %p510_p8, %p669_p9  ;;  %p517_p1 = scmp.lt.s32.totalorder %s515_s29, %s509_s28 }
  0x33   : > { %p512_p12 = pneg %p511_p11  ;;  %p518_p2 = por %p517_p1, %p516_p0 }
  0x35   : > { %p519_p3 = pnand %p518_p2, %p512_p12 }
  0x9f   : > { %v206_v4 = vpop.permute.xlu0 %205 }
  0xa0   : > { %404 = vmatpush3.msra.mxu0 %v206_v4 }
  0xa1   : > { %405 = vmatprep.subr.mxu0 %v592_v0 }
  0xa3   : > { %v203_v5 = vpop.permute.xlu0 %202 }
  0xa4   : > { %406 = vmatpush3.msra.mxu0 %v203_v5 }
  0xa5   : > { %407 = vmatprep.subr.mxu0 %v592_v0 }
  0xa6   : > { %408 = vmatpush3.msra.mxu0 %v200_v2 }
  0xa7   : > { %410 = vmatmul.mubr.msk.f32.vlgmr.msra.gmra.mxu0 %vm215_vm1, %v208_v6 }
  0xa8   : > { %v213_v7 = vpop.permute.xlu1 %212 }
 0x167   : > { %v285_v8 = vpop.f32.mrf.mxu0 }
 0x168   : > { %v286_v9 = vadd.f32 %v285_v8, %v213_v7 }
 0x169   : > { %v411_v10 = vpop.f32.mrf.mxu0 }
 0x16a   : > { %290 = vst.msk [vmem:[%s199_s9] sm:$0xff] %vm289_vm2, %v286_v9 }
 0x16b   : > { %522 = shalt.err (!%p519_p3)
}
 0x16c   : > { %s523_s30 = scalar_lea.hbm %s726_s19, 128  ;;  %s527_s5 = scalar_lea.hbm %s771_s3, 256 }
 0x16d   : > { %p524_p5 = scmp.ne.s32.totalorder %s726_s19, %s523_s30  ;;  %p528_p10 = scmp.lt.s32.totalorder %s726_s19, %s771_s3 }
 0x16e   : > { %p529_p4 = scmp.lt.s32.totalorder %s527_s5, %s523_s30 }
 0x16f   : > { %p525_p6 = pnand %p524_p5, %p669_p9 }
 0x170   : > { %p530_p13 = por %p529_p4, %p528_p10 }
 0x171   : > { %p526_p7 = pneg %p525_p6 }
 0x173   : > { %p531_p8 = pnand %p530_p13, %p526_p7 }
 0x175   : > { %534 = shalt.err (!%p531_p8)
}
 0x176   : > { %414 = dma.vmem_to_hbm [thread:$0]  (%p669_p9), %s307_s10, 128, %s726_s19, %s292_s21  }
 0x177 PF: > { %s318_s7 = sand.u32 1, %s569_s12   ;;  %p777_p11 = scmp.ne.s32.totalorder %s775_s27, 0 }
 0x178   : > { %p778_p12 = scmp.ge.s32.totalorder %s589_s17, 2  ;;  %s319_s8 = scalar_lea.sflag [#allocation4], %s318_s7 }
 0x17a   : > { %p421_p0 = pnand %p778_p12, %p777_p11 }
 0x17c   : > { %p422_p1 = pneg %p421_p0 }
 0x17e   : > { %564 = dma.done.wait (%p422_p1), %s319_s8, 128  }
 0x17f   : > { %566 = vsyncadd (%p422_p1), %s319_s8, 4294967168  ;;  %s19_s17 = sadd.s32 1, %s589_s17   ;;  %s779_s12 = smov %s573_s13 }
 0x180   : > { %p16_p2 = scmp.ge.s32.totalorder %s19_s17, 4   ;;  %s780_s13 = smov %s577_s14 }
 0x181   : > { %s781_s14 = smov %s674_s26  ;;  %s782_s15 = smov %s585_s16 }
 0x182   : > { %s783_s16 = smov %s785_s20  ;;  %18 = sbr.rel (!%p16_p2) target bundleno = 6 (0x6), region = 77 }
 0x187   :  { %324 = vsyncpa [#allocation3], 1 }
 0x188   :  { %326 = vsyncpa [#allocation3 + $0x1], 1 }
 0x189   :  { %327 = vsyncpa [#allocation4], 1 }
 0x18a   :  { %329 = vsyncpa [#allocation4 + $0x1], 1 }

</bundles_post_ra>
